<compile_context>
chip_gen: v5e
topology: v5e:2x2
jax: 0.10.0
libtpu: 0.0.40
codegen_flags: <defaults>
</compile_context>

<pallas_src>
import jax
import jax.numpy as jnp
import numpy as np
from jax.experimental import pallas as pl
from jax.experimental.pallas import tpu as pltpu

LN_EPS = 1e-5


def _layernorm(v, w, b):
    mu = jnp.mean(v, axis=-1, keepdims=True)
    var = jnp.mean((v - mu) ** 2, axis=-1, keepdims=True)
    return (v - mu) * jax.lax.rsqrt(var + LN_EPS) * w + b


def rwkv_block_kernel(x_ref, ln0_w, ln0_b, ln2_w, ln2_b,
                      mix_k, mix_r, wk_ref, wv_ref, wr_ref, out_ref):
    Bb, T, C = x_ref.shape
    M = Bb * T

    # Flatten batch*time into the matmul M dimension (contiguous reinterpretation).
    x = x_ref[...].reshape(M, C).astype(jnp.float32)

    # ln0 (only exists / is applied for layer_id == 0)
    x0 = _layernorm(x, ln0_w[0], ln0_b[0])

    # TODO(synk): RWKVBlockBase._attention is an abstract method with no body;
    # its contribution is treated as zero here (att = 0), so x1 = x0 + 0.
    x1 = x0

    # ffn = RWKVChannelMix applied to ln2(x1), state=None
    x2 = _layernorm(x1, ln2_w[0], ln2_b[0])

    # time_shift = ZeroPad2d((0,0,1,-1)):  xx[b, t] = x2[b, t-1],  xx[b, 0] = 0.
    # XLU roll over the flattened (batch*time) sublane axis; the row that wraps from the
    # previous batch (or from the end of the tensor) is exactly a "t == 0" row, which the
    # iota mask zeroes out, so semantics match the per-batch zero-padded shift.
    rolled = pltpu.roll(x2, shift=1, axis=0)
    row_idx = jax.lax.broadcasted_iota(jnp.int32, (M, C), 0)
    xx = jnp.where(row_idx % T == 0, jnp.zeros_like(rolled), rolled)

    mk = mix_k[0]
    mr = mix_r[0]
    xk = x2 * mk + xx * (1.0 - mk)
    xr = x2 * mr + xx * (1.0 - mr)

    # bf16 MXU operands, f32 accumulation.
    wdt = wk_ref.dtype
    k = jnp.dot(xk.astype(wdt), wk_ref[...],
                preferred_element_type=jnp.float32)              # (M, 4C)
    k = jnp.maximum(k, 0.0)
    k = k * k                                                    # square(relu(k)), f32
    kv = jnp.dot(k.astype(wv_ref.dtype), wv_ref[...],
                 preferred_element_type=jnp.float32)             # (M, C)
    r = jax.nn.sigmoid(jnp.dot(xr.astype(wr_ref.dtype), wr_ref[...],
                               preferred_element_type=jnp.float32))  # (M, C)

    y = x1 + r * kv
    out_ref[...] = y.reshape(Bb, T, C).astype(out_ref.dtype)


def rwkv_block(x, params, *, block_b=None):
    B, T, C = x.shape
    H = params["wk"].shape[1]
    wbytes = jnp.dtype(params["wk"].dtype).itemsize

    if block_b is None:
        # Largest batch tile that divides B while keeping the flattened matmul M = block_b*T
        # in a reasonable range (amortize per-step overhead, fill the MXU row dimension).
        block_b = 1
        for cand in range(B, 0, -1):
            if B % cand == 0 and cand * T <= 1024:
                block_b = cand
                break
    assert B % block_b == 0
    grid = (B // block_b,)

    def const_spec(shape):
        # full-array block, same tile every grid step (weights / per-channel vectors)
        return pl.BlockSpec(shape, lambda b, _n=len(shape): (0,) * _n)

    # VMEM budget: double-buffered bf16 weights + f32 x/out tiles + headroom for temporaries.
    # Capped at 64 MiB so the request is legal on v7x as well as v5e/v6e.
    vmem_needed = (2 * wbytes * (C * H + H * C + C * C)       # weights (double-buffered)
                   + 2 * 4 * 2 * block_b * T * C              # x + out f32 tiles
                   + (8 << 20))                               # intermediates / slack
    vmem_limit = int(min(max(vmem_needed, 32 << 20), 64 << 20))

    return pl.pallas_call(
        rwkv_block_kernel,
        out_shape=jax.ShapeDtypeStruct((B, T, C), x.dtype),
        grid=grid,
        in_specs=[
            pl.BlockSpec((block_b, T, C), lambda b: (b, 0, 0)),  # x: block_b batch rows/step
            const_spec((1, C)), const_spec((1, C)),              # ln0 w, b
            const_spec((1, C)), const_spec((1, C)),              # ln2 w, b
            const_spec((1, C)), const_spec((1, C)),              # channel_mix_k, channel_mix_r
            const_spec((C, H)),                                  # key.weight^T      (bf16)
            const_spec((H, C)),                                  # value.weight^T    (bf16)
            const_spec((C, C)),                                  # receptance.weight^T (bf16)
        ],
        out_specs=pl.BlockSpec((block_b, T, C), lambda b: (b, 0, 0)),
        compiler_params=pltpu.CompilerParams(
            dimension_semantics=("parallel",),
            vmem_limit_bytes=vmem_limit,
        ),
    )(x, params["ln0_w"], params["ln0_b"], params["ln2_w"], params["ln2_b"],
      params["mix_k"], params["mix_r"], params["wk"], params["wv"], params["wr"])


def rwkv_block_ref(x, params):
    """Pure-JAX f32 reference of the same forward pass (for correctness check)."""
    wk = params["wk"].astype(jnp.float32)
    wv = params["wv"].astype(jnp.float32)
    wr = params["wr"].astype(jnp.float32)
    x0 = _layernorm(x, params["ln0_w"][0], params["ln0_b"][0])
    x1 = x0  # att = 0 (abstract _attention)
    x2 = _layernorm(x1, params["ln2_w"][0], params["ln2_b"][0])
    xx = jnp.pad(x2, ((0, 0), (1, 0), (0, 0)))[:, :-1, :]
    mk, mr = params["mix_k"][0], params["mix_r"][0]
    xk = x2 * mk + xx * (1.0 - mk)
    xr = x2 * mr + xx * (1.0 - mr)
    k = jnp.square(jnp.maximum(xk @ wk, 0.0))
    kv = k @ wv
    r = jax.nn.sigmoid(xr @ wr)
    return x1 + r * kv


if __name__ == "__main__":
    # Config: embedding_size=32, num_hidden_layers=12, layer_id=0, batch=2, seq=8
    B, T, C = 2, 8, 32
    H = 4 * C
    layer_id, num_hidden_layers = 0, 12
    ratio_1_to_almost0 = 1.0 - layer_id / num_hidden_layers

    key = jax.random.PRNGKey(0)
    kx, kk, kv, kr = jax.random.split(key, 4)

    x = jax.random.normal(kx, (B, T, C), jnp.float32)

    # positional weight-decay vectors: (i / C) ** ratio
    pos = (jnp.arange(C, dtype=jnp.float32) / C) ** ratio_1_to_almost0

    params = {
        # LayerNorm default init: weight=1, bias=0
        "ln0_w": jnp.ones((1, C), jnp.float32),
        "ln0_b": jnp.zeros((1, C), jnp.float32),
        "ln2_w": jnp.ones((1, C), jnp.float32),
        "ln2_b": jnp.zeros((1, C), jnp.float32),
        "mix_k": pos.reshape(1, C),
        "mix_r": pos.reshape(1, C),
        # Linear weights stored pre-transposed (kernel computes x @ W), in bf16 for
        # weight-traffic/VMEM savings; matmul accumulation stays f32 in-kernel.
        "wk": (0.1 * jax.random.normal(kk, (C, H), jnp.float32)).astype(jnp.bfloat16),
        "wv": (0.1 * jax.random.normal(kv, (H, C), jnp.float32)).astype(jnp.bfloat16),
        "wr": (0.1 * jax.random.normal(kr, (C, C), jnp.float32)).astype(jnp.bfloat16),
    }

    out = rwkv_block(x, params)
    out = jax.block_until_ready(out)

    ref = jax.block_until_ready(rwkv_block_ref(x, params))
    # bf16 matmul operands (f32 accumulation) => loosened tolerance vs the f32 reference.
    np.testing.assert_allclose(np.asarray(out), np.asarray(ref), rtol=2e-2, atol=2e-2)

    print("KERNEL_OK")
</pallas_src>

<mosaic_0001>
module attributes {stable_mosaic.version = 11 : i64} {
  func.func @rwkv_block_kernel(%arg0: i32, %arg1: memref<2x8x32xf32, #tpu.memory_space<vmem>>, %arg2: memref<1x32xf32, #tpu.memory_space<vmem>>, %arg3: memref<1x32xf32, #tpu.memory_space<vmem>>, %arg4: memref<1x32xf32, #tpu.memory_space<vmem>>, %arg5: memref<1x32xf32, #tpu.memory_space<vmem>>, %arg6: memref<1x32xf32, #tpu.memory_space<vmem>>, %arg7: memref<1x32xf32, #tpu.memory_space<vmem>>, %arg8: memref<32x128xbf16, #tpu.memory_space<vmem>>, %arg9: memref<128x32xbf16, #tpu.memory_space<vmem>>, %arg10: memref<32x32xbf16, #tpu.memory_space<vmem>>, %arg11: memref<2x8x32xf32, #tpu.memory_space<vmem>>) attributes {dimension_semantics = [#tpu.dimension_semantics<parallel>], iteration_bounds = array<i64: 1>, scalar_prefetch = 0 : i64, scratch_operands = 0 : i64, tpu.core_type = #tpu.core_type<tc>, window_params = [{transform_indices = @transform_0, window_bounds = array<i64: 2, 8, 32>}, {pipeline_mode = #tpu.pipeline_mode<synchronous>, transform_indices = @transform_1, window_bounds = array<i64: 1, 32>}, {pipeline_mode = #tpu.pipeline_mode<synchronous>, transform_indices = @transform_2, window_bounds = array<i64: 1, 32>}, {pipeline_mode = #tpu.pipeline_mode<synchronous>, transform_indices = @transform_3, window_bounds = array<i64: 1, 32>}, {pipeline_mode = #tpu.pipeline_mode<synchronous>, transform_indices = @transform_4, window_bounds = array<i64: 1, 32>}, {pipeline_mode = #tpu.pipeline_mode<synchronous>, transform_indices = @transform_5, window_bounds = array<i64: 1, 32>}, {pipeline_mode = #tpu.pipeline_mode<synchronous>, transform_indices = @transform_6, window_bounds = array<i64: 1, 32>}, {pipeline_mode = #tpu.pipeline_mode<synchronous>, transform_indices = @transform_7, window_bounds = array<i64: 32, 128>}, {pipeline_mode = #tpu.pipeline_mode<synchronous>, transform_indices = @transform_8, window_bounds = array<i64: 128, 32>}, {pipeline_mode = #tpu.pipeline_mode<synchronous>, transform_indices = @transform_9, window_bounds = array<i64: 32, 32>}, {transform_indices = @transform_10, window_bounds = array<i64: 2, 8, 32>}]} {
    %c0 = arith.constant 0 : index
    %c0_0 = arith.constant 0 : index
    %c0_1 = arith.constant 0 : index
    %0 = vector.load %arg1[%c0, %c0_0, %c0_1] : memref<2x8x32xf32, #tpu.memory_space<vmem>>, vector<2x8x32xf32>
    %1 = vector.shape_cast %0 : vector<2x8x32xf32> to vector<16x32xf32>
    %c0_2 = arith.constant 0 : index
    %c0_3 = arith.constant 0 : index
    %2 = vector.load %arg2[%c0_2, %c0_3] : memref<1x32xf32, #tpu.memory_space<vmem>>, vector<1x32xf32>
    %3 = vector.shape_cast %2 : vector<1x32xf32> to vector<32xf32>
    %c0_4 = arith.constant 0 : index
    %c0_5 = arith.constant 0 : index
    %4 = vector.load %arg3[%c0_4, %c0_5] : memref<1x32xf32, #tpu.memory_space<vmem>>, vector<1x32xf32>
    %5 = vector.shape_cast %4 : vector<1x32xf32> to vector<32xf32>
    %cst = arith.constant dense<0.000000e+00> : vector<16xf32>
    %6 = vector.multi_reduction <add>, %1, %cst [1] : vector<16x32xf32> to vector<16xf32>
    %7 = vector.shape_cast %6 : vector<16xf32> to vector<16x1xf32>
    %cst_6 = arith.constant 3.200000e+01 : f32
    %8 = vector.broadcast %cst_6 : f32 to vector<16x1xf32>
    %9 = arith.divf %7, %8 : vector<16x1xf32>
    %10 = vector.broadcast %9 : vector<16x1xf32> to vector<16x32xf32>
    %11 = arith.subf %1, %10 : vector<16x32xf32>
    %12 = arith.mulf %11, %11 : vector<16x32xf32>
    %cst_7 = arith.constant dense<0.000000e+00> : vector<16xf32>
    %13 = vector.multi_reduction <add>, %12, %cst_7 [1] : vector<16x32xf32> to vector<16xf32>
    %14 = vector.shape_cast %13 : vector<16xf32> to vector<16x1xf32>
    %cst_8 = arith.constant 3.200000e+01 : f32
    %15 = vector.broadcast %cst_8 : f32 to vector<16x1xf32>
    %16 = arith.divf %14, %15 : vector<16x1xf32>
    %17 = vector.broadcast %9 : vector<16x1xf32> to vector<16x32xf32>
    %18 = arith.subf %1, %17 : vector<16x32xf32>
    %cst_9 = arith.constant 9.99999974E-6 : f32
    %19 = vector.broadcast %cst_9 : f32 to vector<16x1xf32>
    %20 = arith.addf %16, %19 : vector<16x1xf32>
    %21 = math.rsqrt %20 : vector<16x1xf32>
    %22 = vector.broadcast %21 : vector<16x1xf32> to vector<16x32xf32>
    %23 = arith.mulf %18, %22 : vector<16x32xf32>
    %24 = vector.shape_cast %3 : vector<32xf32> to vector<1x32xf32>
    %25 = vector.broadcast %24 : vector<1x32xf32> to vector<16x32xf32>
    %26 = arith.mulf %23, %25 : vector<16x32xf32>
    %27 = vector.shape_cast %5 : vector<32xf32> to vector<1x32xf32>
    %28 = vector.broadcast %27 : vector<1x32xf32> to vector<16x32xf32>
    %29 = arith.addf %26, %28 : vector<16x32xf32>
    %c0_10 = arith.constant 0 : index
    %c0_11 = arith.constant 0 : index
    %30 = vector.load %arg4[%c0_10, %c0_11] : memref<1x32xf32, #tpu.memory_space<vmem>>, vector<1x32xf32>
    %31 = vector.shape_cast %30 : vector<1x32xf32> to vector<32xf32>
    %c0_12 = arith.constant 0 : index
    %c0_13 = arith.constant 0 : index
    %32 = vector.load %arg5[%c0_12, %c0_13] : memref<1x32xf32, #tpu.memory_space<vmem>>, vector<1x32xf32>
    %33 = vector.shape_cast %32 : vector<1x32xf32> to vector<32xf32>
    %cst_14 = arith.constant dense<0.000000e+00> : vector<16xf32>
    %34 = vector.multi_reduction <add>, %29, %cst_14 [1] : vector<16x32xf32> to vector<16xf32>
    %35 = vector.shape_cast %34 : vector<16xf32> to vector<16x1xf32>
    %cst_15 = arith.constant 3.200000e+01 : f32
    %36 = vector.broadcast %cst_15 : f32 to vector<16x1xf32>
    %37 = arith.divf %35, %36 : vector<16x1xf32>
    %38 = vector.broadcast %37 : vector<16x1xf32> to vector<16x32xf32>
    %39 = arith.subf %29, %38 : vector<16x32xf32>
    %40 = arith.mulf %39, %39 : vector<16x32xf32>
    %cst_16 = arith.constant dense<0.000000e+00> : vector<16xf32>
    %41 = vector.multi_reduction <add>, %40, %cst_16 [1] : vector<16x32xf32> to vector<16xf32>
    %42 = vector.shape_cast %41 : vector<16xf32> to vector<16x1xf32>
    %cst_17 = arith.constant 3.200000e+01 : f32
    %43 = vector.broadcast %cst_17 : f32 to vector<16x1xf32>
    %44 = arith.divf %42, %43 : vector<16x1xf32>
    %45 = vector.broadcast %37 : vector<16x1xf32> to vector<16x32xf32>
    %46 = arith.subf %29, %45 : vector<16x32xf32>
    %cst_18 = arith.constant 9.99999974E-6 : f32
    %47 = vector.broadcast %cst_18 : f32 to vector<16x1xf32>
    %48 = arith.addf %44, %47 : vector<16x1xf32>
    %49 = math.rsqrt %48 : vector<16x1xf32>
    %50 = vector.broadcast %49 : vector<16x1xf32> to vector<16x32xf32>
    %51 = arith.mulf %46, %50 : vector<16x32xf32>
    %52 = vector.shape_cast %31 : vector<32xf32> to vector<1x32xf32>
    %53 = vector.broadcast %52 : vector<1x32xf32> to vector<16x32xf32>
    %54 = arith.mulf %51, %53 : vector<16x32xf32>
    %55 = vector.shape_cast %33 : vector<32xf32> to vector<1x32xf32>
    %56 = vector.broadcast %55 : vector<1x32xf32> to vector<16x32xf32>
    %57 = arith.addf %54, %56 : vector<16x32xf32>
    %c1_i32 = arith.constant 1 : i32
    %58 = tpu.dynamic_rotate %57 by %c1_i32 dim 0 : vector<16x32xf32>, i32 -> vector<16x32xf32>
    %59 = tpu.iota {dimensions = array<i32: 0>} : vector<16x32xi32>
    %c8_i32 = arith.constant 8 : i32
    %c0_i32 = arith.constant 0 : i32
    %60 = arith.cmpi eq, %c8_i32, %c0_i32 : i32
    %c1_i32_19 = arith.constant 1 : i32
    %61 = arith.select %60, %c1_i32_19, %c8_i32 : i32
    %62 = vector.broadcast %61 : i32 to vector<16x32xi32>
    %63 = arith.remsi %59, %62 : vector<16x32xi32>
    %c0_i32_20 = arith.constant 0 : i32
    %64 = vector.broadcast %c0_i32_20 : i32 to vector<16x32xi32>
    %65 = arith.cmpi ne, %63, %64 : vector<16x32xi32>
    %c0_i32_21 = arith.constant 0 : i32
    %66 = vector.broadcast %c0_i32_21 : i32 to vector<16x32xi32>
    %67 = arith.cmpi slt, %63, %66 : vector<16x32xi32>
    %c0_i32_22 = arith.constant 0 : i32
    %68 = arith.cmpi slt, %61, %c0_i32_22 : i32
    %69 = vector.broadcast %68 : i1 to vector<16x32xi1>
    %70 = vector.broadcast %69 : vector<16x32xi1> to vector<16x32xi1>
    %71 = arith.xori %67, %70 : vector<16x32xi1>
    %72 = arith.andi %71, %65 : vector<16x32xi1>
    %73 = vector.broadcast %61 : i32 to vector<16x32xi32>
    %74 = arith.addi %63, %73 : vector<16x32xi32>
    %75 = arith.select %72, %74, %63 : vector<16x32xi1>, vector<16x32xi32>
    %c0_i32_23 = arith.constant 0 : i32
    %76 = vector.broadcast %c0_i32_23 : i32 to vector<16x32xi32>
    %77 = arith.cmpi eq, %75, %76 : vector<16x32xi32>
    %cst_24 = arith.constant 0.000000e+00 : f32
    %78 = vector.broadcast %cst_24 : f32 to vector<16x32xf32>
    %79 = arith.select %77, %78, %58 : vector<16x32xi1>, vector<16x32xf32>
    %c0_25 = arith.constant 0 : index
    %c0_26 = arith.constant 0 : index
    %80 = vector.load %arg6[%c0_25, %c0_26] : memref<1x32xf32, #tpu.memory_space<vmem>>, vector<1x32xf32>
    %81 = vector.shape_cast %80 : vector<1x32xf32> to vector<32xf32>
    %c0_27 = arith.constant 0 : index
    %c0_28 = arith.constant 0 : index
    %82 = vector.load %arg7[%c0_27, %c0_28] : memref<1x32xf32, #tpu.memory_space<vmem>>, vector<1x32xf32>
    %83 = vector.shape_cast %82 : vector<1x32xf32> to vector<32xf32>
    %84 = vector.shape_cast %81 : vector<32xf32> to vector<1x32xf32>
    %85 = vector.broadcast %84 : vector<1x32xf32> to vector<16x32xf32>
    %86 = arith.mulf %57, %85 : vector<16x32xf32>
    %cst_29 = arith.constant 1.000000e+00 : f32
    %87 = vector.broadcast %cst_29 : f32 to vector<32xf32>
    %88 = arith.subf %87, %81 : vector<32xf32>
    %89 = vector.shape_cast %88 : vector<32xf32> to vector<1x32xf32>
    %90 = vector.broadcast %89 : vector<1x32xf32> to vector<16x32xf32>
    %91 = arith.mulf %79, %90 : vector<16x32xf32>
    %92 = arith.addf %86, %91 : vector<16x32xf32>
    %93 = vector.shape_cast %83 : vector<32xf32> to vector<1x32xf32>
    %94 = vector.broadcast %93 : vector<1x32xf32> to vector<16x32xf32>
    %95 = arith.mulf %57, %94 : vector<16x32xf32>
    %cst_30 = arith.constant 1.000000e+00 : f32
    %96 = vector.broadcast %cst_30 : f32 to vector<32xf32>
    %97 = arith.subf %96, %83 : vector<32xf32>
    %98 = vector.shape_cast %97 : vector<32xf32> to vector<1x32xf32>
    %99 = vector.broadcast %98 : vector<1x32xf32> to vector<16x32xf32>
    %100 = arith.mulf %79, %99 : vector<16x32xf32>
    %101 = arith.addf %95, %100 : vector<16x32xf32>
    %102 = arith.truncf %92 : vector<16x32xf32> to vector<16x32xbf16>
    %c0_31 = arith.constant 0 : index
    %c0_32 = arith.constant 0 : index
    %103 = vector.load %arg8[%c0_31, %c0_32] : memref<32x128xbf16, #tpu.memory_space<vmem>>, vector<32x128xbf16>
    %cst_33 = arith.constant dense<0.000000e+00> : vector<16x128xf32>
    %104 = tpu.matmul %102, %103, %cst_33 {dimension_numbers = #tpu.dot_dimension_numbers<[1], [0], [0], [1], [0, 0, 1, 1], [], []>} : vector<16x32xbf16>, vector<32x128xbf16>, vector<16x128xf32> -> vector<16x128xf32>
    %cst_34 = arith.constant 0.000000e+00 : f32
    %105 = vector.broadcast %cst_34 : f32 to vector<16x128xf32>
    %106 = arith.maximumf %104, %105 : vector<16x128xf32>
    %107 = arith.mulf %106, %106 : vector<16x128xf32>
    %108 = arith.truncf %107 : vector<16x128xf32> to vector<16x128xbf16>
    %c0_35 = arith.constant 0 : index
    %c0_36 = arith.constant 0 : index
    %109 = vector.load %arg9[%c0_35, %c0_36] : memref<128x32xbf16, #tpu.memory_space<vmem>>, vector<128x32xbf16>
    %cst_37 = arith.constant dense<0.000000e+00> : vector<16x32xf32>
    %110 = tpu.matmul %108, %109, %cst_37 {dimension_numbers = #tpu.dot_dimension_numbers<[1], [0], [0], [1], [0, 0, 1, 1], [], []>} : vector<16x128xbf16>, vector<128x32xbf16>, vector<16x32xf32> -> vector<16x32xf32>
    %111 = arith.truncf %101 : vector<16x32xf32> to vector<16x32xbf16>
    %c0_38 = arith.constant 0 : index
    %c0_39 = arith.constant 0 : index
    %112 = vector.load %arg10[%c0_38, %c0_39] : memref<32x32xbf16, #tpu.memory_space<vmem>>, vector<32x32xbf16>
    %cst_40 = arith.constant dense<0.000000e+00> : vector<16x32xf32>
    %113 = tpu.matmul %111, %112, %cst_40 {dimension_numbers = #tpu.dot_dimension_numbers<[1], [0], [0], [1], [0, 0, 1, 1], [], []>} : vector<16x32xbf16>, vector<32x32xbf16>, vector<16x32xf32> -> vector<16x32xf32>
    %114 = arith.negf %113 : vector<16x32xf32>
    %115 = math.exp %114 : vector<16x32xf32>
    %cst_41 = arith.constant 1.000000e+00 : f32
    %116 = vector.broadcast %cst_41 : f32 to vector<16x32xf32>
    %117 = arith.addf %116, %115 : vector<16x32xf32>
    %118 = arith.divf %116, %117 : vector<16x32xf32>
    %119 = arith.mulf %118, %110 : vector<16x32xf32>
    %120 = arith.addf %29, %119 : vector<16x32xf32>
    %121 = vector.shape_cast %120 : vector<16x32xf32> to vector<2x8x32xf32>
    %c0_42 = arith.constant 0 : index
    %c0_43 = arith.constant 0 : index
    %c0_44 = arith.constant 0 : index
    %122 = vector.load %arg11[%c0_42, %c0_43, %c0_44] : memref<2x8x32xf32, #tpu.memory_space<vmem>>, vector<2x8x32xf32>
    tpu.vector_store %arg11[%c0_42, %c0_43, %c0_44], %121 {strides = array<i32>} : memref<2x8x32xf32, #tpu.memory_space<vmem>>, vector<2x8x32xf32>,
    return
  }
  func.func @transform_0(%arg0: i32) -> (i32, i32, i32) {
    %c0_i32 = arith.constant 0 : i32
    %c0_i32_0 = arith.constant 0 : i32
    %c0_i32_1 = arith.constant 0 : i32
    return %arg0, %c0_i32, %c0_i32_0 : i32, i32, i32
  }
  func.func @transform_1(%arg0: i32) -> (i32, i32) {
    %c0_i32 = arith.constant 0 : i32
    %c0_i32_0 = arith.constant 0 : i32
    %c0_i32_1 = arith.constant 0 : i32
    return %c0_i32, %c0_i32_0 : i32, i32
  }
  func.func @transform_2(%arg0: i32) -> (i32, i32) {
    %c0_i32 = arith.constant 0 : i32
    %c0_i32_0 = arith.constant 0 : i32
    %c0_i32_1 = arith.constant 0 : i32
    return %c0_i32, %c0_i32_0 : i32, i32
  }
  func.func @transform_3(%arg0: i32) -> (i32, i32) {
    %c0_i32 = arith.constant 0 : i32
    %c0_i32_0 = arith.constant 0 : i32
    %c0_i32_1 = arith.constant 0 : i32
    return %c0_i32, %c0_i32_0 : i32, i32
  }
  func.func @transform_4(%arg0: i32) -> (i32, i32) {
    %c0_i32 = arith.constant 0 : i32
    %c0_i32_0 = arith.constant 0 : i32
    %c0_i32_1 = arith.constant 0 : i32
    return %c0_i32, %c0_i32_0 : i32, i32
  }
  func.func @transform_5(%arg0: i32) -> (i32, i32) {
    %c0_i32 = arith.constant 0 : i32
    %c0_i32_0 = arith.constant 0 : i32
    %c0_i32_1 = arith.constant 0 : i32
    return %c0_i32, %c0_i32_0 : i32, i32
  }
  func.func @transform_6(%arg0: i32) -> (i32, i32) {
    %c0_i32 = arith.constant 0 : i32
    %c0_i32_0 = arith.constant 0 : i32
    %c0_i32_1 = arith.constant 0 : i32
    return %c0_i32, %c0_i32_0 : i32, i32
  }
  func.func @transform_7(%arg0: i32) -> (i32, i32) {
    %c0_i32 = arith.constant 0 : i32
    %c0_i32_0 = arith.constant 0 : i32
    %c0_i32_1 = arith.constant 0 : i32
    return %c0_i32, %c0_i32_0 : i32, i32
  }
  func.func @transform_8(%arg0: i32) -> (i32, i32) {
    %c0_i32 = arith.constant 0 : i32
    %c0_i32_0 = arith.constant 0 : i32
    %c0_i32_1 = arith.constant 0 : i32
    return %c0_i32, %c0_i32_0 : i32, i32
  }
  func.func @transform_9(%arg0: i32) -> (i32, i32) {
    %c0_i32 = arith.constant 0 : i32
    %c0_i32_0 = arith.constant 0 : i32
    %c0_i32_1 = arith.constant 0 : i32
    return %c0_i32, %c0_i32_0 : i32, i32
  }
  func.func @transform_10(%arg0: i32) -> (i32, i32, i32) {
    %c0_i32 = arith.constant 0 : i32
    %c0_i32_0 = arith.constant 0 : i32
    %c0_i32_1 = arith.constant 0 : i32
    return %arg0, %c0_i32, %c0_i32_0 : i32, i32, i32
  }
}

</mosaic_0001>

<bundles_post_ra>
// kernel: tpu_custom_call.1
= control target key start
LH: loop header
LB: loop body
LE: loop exit
PB: predicated region body
PF: predicated region fallthrough
CT: control target
= control target key end

     0   :  { %vm41_vm0 = vcmask 261120   ;;  %s714_s0 = inlined_call_operand.vmem [shape: f32[2,8,32], index: 0, kind: input, shape index: {}]   ;;  %s715_s1 = inlined_call_operand.vmem [shape: f32[1,32], index: 1, kind: input, shape index: {}]   ;;  %s716_s2 = inlined_call_operand.vmem [shape: f32[1,32], index: 2, kind: input, shape index: {}]   ;;  %s717_s3 = inlined_call_operand.vmem [shape: f32[1,32], index: 3, kind: input, shape index: {}]   ;;  %s718_s4 = inlined_call_operand.vmem [shape: f32[1,32], index: 4, kind: input, shape index: {}]   ;;  %s719_s5 = inlined_call_operand.vmem [shape: f32[1,32], index: 5, kind: input, shape index: {}]   ;;  %s720_s6 = inlined_call_operand.vmem [shape: f32[1,32], index: 6, kind: input, shape index: {}]   ;;  %s721_s7 = inlined_call_operand.vmem [shape: bf16[32,128], index: 7, kind: input, shape index: {}]   ;;  %s722_s8 = inlined_call_operand.vmem [shape: bf16[128,32], index: 8, kind: input, shape index: {}]   ;;  %s723_s9 = inlined_call_operand.vmem [shape: bf16[32,32], index: 9, kind: input, shape index: {}]   ;;  %s724_s10 = inlined_call_operand.hbm [shape: f32[2,8,32], index: 10, kind: output, shape index: {}]  }
   0x1   :  { %v37_v0 = vld [vmem:[%s714_s0] sm:$0xff] }
   0x2   :  { %v42_v1 = vsel %vm41_vm0, %v37_v0, 0.0 }
   0x3   :  { %43 = vadd.xlane.f32.xlu0 %v42_v1 }
   0x4   :  { %15 = vsyncpa [#allocation3], 0  ;;  %v38_v2 = vld [vmem:[%s714_s0 + $0x8] sm:$0xff]  ;;  %v554_v4 = vmov 32.0   ;;  %v504_v35 = vld [vmem:[%s715_s1] ss:$0 sm:$0xff] }
   0x5   :  { %v45_v3 = vsel %vm41_vm0, %v38_v2, 0.0  ;;  %510 = vrcp.f32 %v554_v4  ;;  %v505_v39 = vld [vmem:[%s716_s2] ss:$0 sm:$0xff]  ;;  %v489_v63 = vld [vmem:[%s721_s7 + $0x8] sm:$0xff]  ;;  %s556_s28 = smov 128  }
   0x6   :  { %249 = vmatpush.bf16.msra.mxu0 %v489_v63 }
   0xb   :  { %46 = vadd.xlane.f32.xlu0 %v45_v3  ;;  %v511_v5 = vpop.eup %510  ;;  %v498_v3 = vld [vmem:[%s723_s9] sm:$0xff] }
   0xc   :  { %v49_v6 = vmul.f32 32.0, %v511_v5  ;;  %vm53_vm1 = vweird.f32 %v511_v5 }
   0xe   :  { %v50_v7 = vsub.f32 1.0, %v49_v6 }
  0x10   :  { %v51_v8 = vmul.f32 %v511_v5, %v50_v7 }
  0x12   :  { %v52_v9 = vadd.f32 %v511_v5, %v51_v8 }
  0x14   :  { %v621_v10 = vsel %vm53_vm1, %v511_v5, %v52_v9 }
  0x76   :  { %v44_v11 = vpop.xlane.xlu0 %43 }
  0x77   :  { %v55_v12 = vmul.f32 %v621_v10, %v44_v11  ;;  %v497_v11 = vld [vmem:[%s722_s8 + $0x38] sm:$0xff] }
  0x78   :  { %326 = vmatpush.bf16.msra.mxu1 %v497_v11 }
  0x79   :  { %v57_v13 = vsub.f32 %v37_v0, %v55_v12  ;;  %v499_v0 = vld [vmem:[%s723_s9 + $0x8] sm:$0xff]  ;;  %s557_s9 = smov 8  }
  0x7a   :  { %366 = vmatpush.bf16.msra.mxu2 %v499_v0 }
  0x7b   :  { %v59_v14 = vmul.f32 %v57_v13, %v57_v13 }
  0x7d   :  { %v61_v15 = vsel %vm41_vm0, %v59_v14, 0.0 }
  0x7e   :  { %62 = vadd.xlane.f32.xlu1 %v61_v15  ;;  %v47_v16 = vpop.xlane.xlu0 %46  ;;  %367 = vmatpush.bf16.msra.mxu2 %v498_v3 }
  0x7f   :  { %v56_v17 = vmul.f32 %v621_v10, %v47_v16 }
  0x81   :  { %v58_v18 = vsub.f32 %v38_v2, %v56_v17  ;;  %v488_v2 = vld [vmem:[%s721_s7] sm:$0xff]  ;;  %v161_v17 = vlaneseq  ;;  %s424_s7 = sshll.u32 %s724_s10, 4  ;;  %s425_s7 = int_to_ptr.hbm [resolvable:$true] %s424_s7 }
  0x82   :  { %250 = vmatpush.bf16.msra.mxu0 %v488_v2 }
  0x83   :  { %v60_v19 = vmul.f32 %v58_v18, %v58_v18 }
  0x85   :  { %v64_v20 = vsel %vm41_vm0, %v60_v19, 0.0 }
  0x86   :  { %65 = vadd.xlane.f32.xlu1 %v64_v20 }
  0xf1   :  { %v63_v21 = vpop.xlane.xlu1 %62 }
  0xf2   :  { %v67_v22 = vmul.f32 %v63_v21, %v621_v10 }
  0xf4   :  { %v69_v23 = vadd.f32 1e-05, %v67_v22  ;;  %v162_v22 = vshrl.u32 %v161_v17, 7 }
  0xf6   :  { %512 = vrsqrt.f32 %v69_v23  ;;  %vm77_vm3 = vweird.f32 %v69_v23  ;;  %vm163_vm14 = vcmp.lt.s32.totalorder %v162_v22, 1 }
  0xf9   :  { %v66_v24 = vpop.xlane.xlu1 %65 }
  0xfa   :  { %v68_v25 = vmul.f32 %v66_v24, %v621_v10 }
  0xfc   :  { %v513_v26 = vpop.eup %512  ;;  %v70_v27 = vadd.f32 1e-05, %v68_v25  ;;  %v494_v25 = vld [vmem:[%s722_s8 + $0x20] sm:$0xff] }
  0xfd   :  { %v72_v28 = vmul.f32 %v513_v26, %v69_v23  ;;  %vm78_vm2 = vweird.f32 %v513_v26  ;;  %v506_v23 = vld [vmem:[%s717_s3] ss:$0 sm:$0xff] }
  0xfe   :  { %514 = vrsqrt.f32 %v70_v27  ;;  %vm79_vm4 = vmor %vm77_vm3, %vm78_vm2  ;;  %vm87_vm6 = vweird.f32 %v70_v27 }
  0xff   :  { %v73_v29 = vmul.f32 %v513_v26, %v72_v28  ;;  %v166_v28 = vadd.s32 8, %v162_v22 }
 0x101   :  { %v74_v30 = vmul.f32 0.5, %v73_v29 }
 0x103   :  { %v75_v31 = vsub.f32 1.5, %v74_v30  ;;  %v507_v30 = vld [vmem:[%s718_s4] ss:$0 sm:$0xff] }
 0x104   :  { %v515_v32 = vpop.eup %514 }
 0x105   :  { %v76_v33 = vmul.f32 %v513_v26, %v75_v31  ;;  %v82_v34 = vmul.f32 %v515_v32, %v70_v27  ;;  %vm88_vm5 = vweird.f32 %v515_v32 }
 0x106   :  { %vm89_vm7 = vmor %vm87_vm6, %vm88_vm5 }
 0x107   :  { %v80_v36 = vsel %vm79_vm4, %v513_v26, %v76_v33  ;;  %v83_v37 = vmul.f32 %v515_v32, %v82_v34  ;;  %v196_v33 = vld [vmem:[%s720_s6] sm:$0x1] }
 0x108   :  { %v91_v38 = vmul.f32 %v80_v36, %v57_v13  ;;  %v496_v13 = vld [vmem:[%s722_s8 + $0x30] sm:$0xff]  ;;  %v178_v36 = vand.u32 7, %v166_v28 }
 0x109   :  { %v84_v40 = vmul.f32 0.5, %v83_v37  ;;  %327 = vmatpush.bf16.msra.mxu1 %v496_v13 }
 0x10a   :  { %v96_v41 = vmul.f32 %v504_v35, %v91_v38  ;;  %vm192_vm1 = vcmp.eq.s32.totalorder %v178_v36, 0 }
 0x10b   :  { %v85_v42 = vsub.f32 1.5, %v84_v40  ;;  %v215_v40 = vsub.f32 1.0, %v196_v33 }
 0x10c   :  { %v635_v43 = vadd.f32 %v505_v39, %v96_v41 }
 0x10d   :  { %v86_v44 = vmul.f32 %v515_v32, %v85_v42  ;;  %v508_v42 = vld [vmem:[%s719_s5] ss:$0 sm:$0xff] }
 0x10e   :  { %v105_v45 = vsel %vm41_vm0, %v635_v43, 0.0 }
 0x10f   :  { %v90_v46 = vsel %vm89_vm7, %v515_v32, %v86_v44  ;;  %106 = vadd.xlane.f32.xlu2 %v105_v45  ;;  %v195_v32 = vld [vmem:[%s719_s5] sm:$0x1] }
 0x110   :  { %v92_v47 = vmul.f32 %v90_v46, %v58_v18  ;;  %v495_v18 = vld [vmem:[%s722_s8 + $0x28] sm:$0xff]  ;;  %v509_v44 = vld [vmem:[%s720_s6] ss:$0 sm:$0xff] }
 0x111   :  { %328 = vmatpush.bf16.msra.mxu1 %v495_v18 }
 0x112   :  { %v97_v48 = vmul.f32 %v504_v35, %v92_v47  ;;  %v171_v35 = vand.u32 7, %v162_v22 }
 0x114   :  { %v639_v49 = vadd.f32 %v505_v39, %v97_v48  ;;  %v202_v39 = vsub.f32 1.0, %v195_v32  ;;  %vm191_vm15 = vcmp.eq.s32.totalorder %v171_v35, 0  ;;  %v217_v48 = vperm.slane %v215_v40, 0 }
 0x115   :  { %329 = vmatpush.bf16.msra.mxu1 %v494_v25 }
 0x116   :  { %v108_v50 = vsel %vm41_vm0, %v639_v49, 0.0  ;;  %v204_v47 = vperm.slane %v202_v39, 0 }
 0x117   :  { %109 = vadd.xlane.f32.xlu2 %v108_v50 }
 0x182   :  { %v107_v51 = vpop.xlane.xlu2 %106 }
 0x183   :  { %v111_v52 = vmul.f32 %v107_v51, %v621_v10 }
 0x185   :  { %v113_v53 = vsub.f32 %v635_v43, %v111_v52 }
 0x187   :  { %v115_v54 = vmul.f32 %v113_v53, %v113_v53 }
 0x189   :  { %v117_v55 = vsel %vm41_vm0, %v115_v54, 0.0 }
 0x18a   :  { %118 = vadd.xlane.f32.xlu0 %v117_v55  ;;  %v110_v56 = vpop.xlane.xlu2 %109 }
 0x18b   :  { %v112_v57 = vmul.f32 %v110_v56, %v621_v10 }
 0x18d   :  { %v114_v58 = vsub.f32 %v639_v49, %v112_v57 }
 0x18f   :  { %v116_v59 = vmul.f32 %v114_v58, %v114_v58 }
 0x191   :  { %v120_v60 = vsel %vm41_vm0, %v116_v59, 0.0 }
 0x192   :  { %121 = vadd.xlane.f32.xlu1 %v120_v60 }
 0x1fd   :  { %v119_v61 = vpop.xlane.xlu0 %118 }
 0x1fe   :  { %v123_v62 = vmul.f32 %v119_v61, %v621_v10 }
 0x200   :  { %v125_v1 = vadd.f32 1e-05, %v123_v62 }
 0x202   :  { %516 = vrsqrt.f32 %v125_v1  ;;  %vm133_vm9 = vweird.f32 %v125_v1 }
 0x205   :  { %v122_v4 = vpop.xlane.xlu1 %121 }
 0x206   :  { %v124_v5 = vmul.f32 %v122_v4, %v621_v10  ;;  %v493_v4 = vld [vmem:[%s722_s8 + $0x18] sm:$0xff] }
 0x207   :  { %330 = vmatpush.bf16.msra.mxu1 %v493_v4 }
 0x208   :  { %v517_v6 = vpop.eup %516  ;;  %v126_v7 = vadd.f32 1e-05, %v124_v5  ;;  %v492_v5 = vld [vmem:[%s722_s8 + $0x10] sm:$0xff] }
 0x209   :  { %v128_v8 = vmul.f32 %v517_v6, %v125_v1  ;;  %vm134_vm8 = vweird.f32 %v517_v6 }
 0x20a   :  { %518 = vrsqrt.f32 %v126_v7  ;;  %vm135_vm10 = vmor %vm133_vm9, %vm134_vm8  ;;  %vm143_vm12 = vweird.f32 %v126_v7 }
 0x20b   :  { %v129_v9 = vmul.f32 %v517_v6, %v128_v8  ;;  %331 = vmatpush.bf16.msra.mxu1 %v492_v5 }
 0x20d   :  { %v130_v12 = vmul.f32 0.5, %v129_v9 }
 0x20f   :  { %v131_v14 = vsub.f32 1.5, %v130_v12 }
 0x210   :  { %v519_v15 = vpop.eup %518 }
 0x211   :  { %v132_v16 = vmul.f32 %v517_v6, %v131_v14  ;;  %v138_v10 = vmul.f32 %v519_v15, %v126_v7  ;;  %vm144_vm11 = vweird.f32 %v519_v15  ;;  %v490_v7 = vld [vmem:[%s722_s8] sm:$0xff] }
 0x212   :  { %vm145_vm13 = vmor %vm143_vm12, %vm144_vm11 }
 0x213   :  { %v136_v19 = vsel %vm135_vm10, %v517_v6, %v132_v16  ;;  %v139_v20 = vmul.f32 %v519_v15, %v138_v10  ;;  %v491_v6 = vld [vmem:[%s722_s8 + $0x8] sm:$0xff]  ;;  %s555_s8 = smov [#allocation2]  }
 0x214   :  { %v147_v24 = vmul.f32 %v136_v19, %v113_v53  ;;  %332 = vmatpush.bf16.msra.mxu1 %v491_v6  ;;  %s422_s25 = sshll.u32 %s555_s8, 4  ;;  %s423_s25 = int_to_ptr.vmem [resolvable:$true] %s422_s25 }
 0x215   :  { %v140_v21 = vmul.f32 0.5, %v139_v20 }
 0x216   :  { %v152_v29 = vmul.f32 %v506_v23, %v147_v24 }
 0x217   :  { %v141_v26 = vsub.f32 1.5, %v140_v21 }
 0x218   :  { %v157_v38 = vadd.f32 %v507_v30, %v152_v29  ;;  %333 = vmatpush.bf16.msra.mxu1 %v490_v7 }
 0x219   :  { %v142_v27 = vmul.f32 %v519_v15, %v141_v26 }
 0x21a   :  { %v159_v45 = vrot.slane %v157_v38, 7  ;;  %v200_v52 = vmul.f32 %v508_v42, %v157_v38  ;;  %v213_v53 = vmul.f32 %v509_v44, %v157_v38 }
 0x21b   :  { %v146_v31 = vsel %vm145_vm13, %v519_v15, %v142_v27 }
 0x21c   :  { %v148_v34 = vmul.f32 %v146_v31, %v114_v58 }
 0x21e   :  { %v153_v37 = vmul.f32 %v506_v23, %v148_v34 }
 0x220   :  { %v158_v41 = vadd.f32 %v507_v30, %v153_v37 }
 0x222   :  { %v160_v46 = vrot.slane %v158_v41, 7  ;;  %v201_v56 = vmul.f32 %v508_v42, %v158_v41  ;;  %v214_v57 = vmul.f32 %v509_v44, %v158_v41 }
 0x224   :  { %v164_v50 = vsel %vm163_vm14, %v159_v45, %v160_v46  ;;  %v165_v51 = vsel %vm163_vm14, %v160_v46, %v159_v45 }
 0x225   :  { %v193_v54 = vsel %vm191_vm15, 0.0, %v165_v51  ;;  %v194_v55 = vsel %vm192_vm1, 0.0, %v164_v50 }
 0x226   :  { %v206_v58 = vmul.f32 %v204_v47, %v193_v54  ;;  %v207_v59 = vmul.f32 %v204_v47, %v194_v55  ;;  %v219_v60 = vmul.f32 %v217_v48, %v193_v54  ;;  %v220_v61 = vmul.f32 %v217_v48, %v194_v55 }
 0x228   :  { %v208_v62 = vadd.f32 %v206_v58, %v200_v52  ;;  %v209_v63 = vadd.f32 %v207_v59, %v201_v56  ;;  %v221_v0 = vadd.f32 %v219_v60, %v213_v53  ;;  %v222_v1 = vadd.f32 %v220_v61, %v214_v57 }
 0x22a   :  { %v223_v2 = vpack.c.bf16 %v209_v63, %v208_v62  ;;  %v340_v3 = vpack.c.bf16 %v222_v1, %v221_v0 }
 0x22c   :  { %444 = vmatmul.msk.bf16.vlgmr.msra.gmra.mxu0 %vm41_vm0, %v223_v2  ;;  %485 = vmatmul.msk.bf16.vlgmr.msra.gmra.mxu2 %vm41_vm0, %v340_v3 }
 0x2a9   :  { %v252_v8 = vpop.f32.mrf.mxu0 }
 0x2aa   :  { %v257_v9 = vmax.f32 %v252_v8, 0.0 }
 0x2ac   :  { %v259_v13 = vmul.f32 %v257_v9, %v257_v9 }
 0x2af   :  { %v369_v16 = vpop.f32.mrf.mxu2 }
 0x2b0   :  { %v486_v10 = vmul.f32 -1.442695, %v369_v16 }
 0x2b1   :  { %v254_v11 = vpop.f32.mrf.mxu0 }
 0x2b2   :  { %v258_v12 = vmax.f32 %v254_v11, 0.0  ;;  %520 = vpow2.f32 %v486_v10 }
 0x2b4   :  { %v260_v14 = vmul.f32 %v258_v12, %v258_v12 }
 0x2b6   :  { %v261_v15 = vpack.c.bf16 %v260_v14, %v259_v13 }
 0x2b7   :  { %v371_v17 = vpop.f32.mrf.mxu2 }
 0x2b8   :  { %334 = vmatmul.bf16.vlgmr.msra.gmra.mxu1 %v261_v15  ;;  %v487_v18 = vmul.f32 -1.442695, %v371_v17  ;;  %v521_v19 = vpop.eup %520 }
 0x2b9   :  { %v380_v20 = vadd.f32 1.0, %v521_v19 }
 0x2ba   :  { %522 = vpow2.f32 %v487_v18 }
 0x2bb   :  { %524 = vrcp.f32 %v380_v20  ;;  %v393_v31 = vand.u32 2147483648, %v380_v20  ;;  %vm387_vm3 = vweird.f32 %v380_v20  ;;  %v391_v32 = vand.u32 2147483647, %v380_v20 }
 0x2bd   :  { %v394_v35 = vor.u32 1.1754944e-38, %v393_v31  ;;  %vm392_vm5 = vcmp.eq.f32.partialorder %v391_v32, 8.507059e+37 }
 0x2c0   :  { %v523_v21 = vpop.eup %522 }
 0x2c1   :  { %v381_v22 = vadd.f32 1.0, %v523_v21  ;;  %v525_v23 = vpop.eup %524 }
 0x2c2   :  { %v383_v24 = vmul.f32 %v525_v23, %v380_v20  ;;  %vm388_vm2 = vweird.f32 %v525_v23 }
 0x2c3   :  { %526 = vrcp.f32 %v381_v22  ;;  %vm389_vm4 = vmor %vm387_vm3, %vm388_vm2  ;;  %v408_v40 = vand.u32 2147483648, %v381_v22  ;;  %vm402_vm7 = vweird.f32 %v381_v22  ;;  %v406_v42 = vand.u32 2147483647, %v381_v22 }
 0x2c4   :  { %v384_v25 = vsub.f32 1.0, %v383_v24 }
 0x2c5   :  { %v409_v45 = vor.u32 1.1754944e-38, %v408_v40  ;;  %vm407_vm9 = vcmp.eq.f32.partialorder %v406_v42, 8.507059e+37 }
 0x2c6   :  { %v385_v27 = vmul.f32 %v525_v23, %v384_v25 }
 0x2c8   :  { %v386_v29 = vadd.f32 %v525_v23, %v385_v27 }
 0x2c9   :  { %v527_v26 = vpop.eup %526 }
 0x2ca   :  { %v398_v28 = vmul.f32 %v527_v26, %v381_v22  ;;  %v390_v33 = vsel %vm389_vm4, %v525_v23, %v386_v29  ;;  %vm403_vm6 = vweird.f32 %v527_v26 }
 0x2cb   :  { %v395_v37 = vsel %vm392_vm5, %v394_v35, %v390_v33  ;;  %vm404_vm8 = vmor %vm402_vm7, %vm403_vm6 }
 0x2cc   :  { %v399_v30 = vsub.f32 1.0, %v398_v28 }
 0x2ce   :  { %v400_v34 = vmul.f32 %v527_v26, %v399_v30 }
 0x2d0   :  { %v401_v39 = vadd.f32 %v527_v26, %v400_v34 }
 0x2d2   :  { %v405_v44 = vsel %vm404_vm8, %v527_v26, %v401_v39 }
 0x2d3   :  { %v410_v47 = vsel %vm407_vm9, %v409_v45, %v405_v44 }
 0x335   :  { %v335_v36 = vpop.f32.mrf.mxu1 }
 0x336   :  { %v412_v38 = vmul.f32 %v395_v37, %v335_v36 }
 0x338   :  { %v414_v41 = vadd.f32 %v412_v38, %v635_v43 }
 0x33a   :  { %416 = vst.msk [vmem:[#allocation2] sm:$0xff] %vm41_vm0, %v414_v41 }
 0x33d   :  { %v337_v46 = vpop.f32.mrf.mxu1 }
 0x33e   :  { %v413_v48 = vmul.f32 %v410_v47, %v337_v46 }
 0x340   :  { %v415_v43 = vadd.f32 %v413_v48, %v639_v49 }
 0x342   :  { %417 = vst.msk [vmem:[#allocation2 + $0x8] sm:$0xff] %vm41_vm0, %v415_v43 }
 0x343   :  { %430 = dma.vmem_to_hbm [thread:$0]  %s423_s25, 256, %s425_s7, [#allocation3], %s556_s28, %s556_s28, %s557_s9  }
 0x344   :  { %552 = dma.done.wait [#allocation3], 256  }
 0x345   :  { %553 = vsyncadd [#allocation3], 4294967040 }
 0x346   :  { %435 = vsyncpa [#allocation3], 1 }

</bundles_post_ra>
